<compile_context>
chip_gen: v6e
topology: v6e:2x2x1
jax: 0.10.0
libtpu: 0.0.40
codegen_flags: <defaults>
</compile_context>

<pallas_src>
import functools
import math

import jax
import jax.numpy as jnp
import numpy as np
from jax.experimental import pallas as pl
from jax.experimental.pallas import tpu as pltpu


def _round_up(x, m):
    return ((x + m - 1) // m) * m


def _cdiv(a, b):
    return -(-a // b)


def _pad2d(a, shape):
    pads = tuple((0, t - s) for s, t in zip(a.shape, shape))
    if any(p[1] for p in pads):
        a = jnp.pad(a, pads)
    return a


def _sublane_granule(dtype):
    # dtype-aware minimum sublane tiling: f32 -> 8, bf16 -> 16, int8/fp8 -> 32.
    return max(8, 8 * (4 // max(1, jnp.dtype(dtype).itemsize)))


def _choose_tile(dim_hw, max_tile, granule, min_blocks=1):
    """dim_hw must be a multiple of granule. Returns (tile, padded_dim).

    Picks the number of blocks first (>= min_blocks, >= ceil(dim/max_tile)) and rounds
    the per-block tile up to the granule, so padding is at most a few granule rows/lanes
    instead of up to tile-1.
    """
    nblk = max(min_blocks, _cdiv(dim_hw, max_tile))
    nblk = max(1, min(nblk, dim_hw // granule))
    tile = _round_up(_cdiv(dim_hw, nblk), granule)
    return tile, tile * nblk


def _epilogue(acc_f32, b_ref, o_ref, weight_gain, activation):
    # Equalized-LR weight gain folded into the f32 accumulator (tm*tn work, once).
    y = acc_f32 * jnp.float32(weight_gain)
    if b_ref is not None:
        # Bias was pre-scaled by lr_multiplier in the wrapper; stored as f32 row.
        y = y + b_ref[...].astype(jnp.float32)
    if activation == "lrelu":
        # bias_act 'lrelu': leaky_relu(0.2) then gain sqrt(2) — folded per branch.
        y = jnp.where(y >= 0,
                      y * jnp.float32(math.sqrt(2.0)),
                      y * jnp.float32(0.2 * math.sqrt(2.0)))
    # activation == 'linear': nothing else to do.
    o_ref[...] = y.astype(o_ref.dtype)


def _fc_kernel_single_k(*refs, weight_gain, activation, has_bias):
    # Fast path: whole K in one tile — no accumulator scratch, no pl.when.
    if has_bias:
        x_ref, wt_ref, b_ref, o_ref = refs
    else:
        x_ref, wt_ref, o_ref = refs
        b_ref = None
    acc = jnp.dot(x_ref[...], wt_ref[...], preferred_element_type=jnp.float32)
    _epilogue(acc, b_ref, o_ref, weight_gain, activation)


def _fc_kernel_multi_k(*refs, weight_gain, activation, has_bias):
    # K-tiled path: f32 VMEM accumulator with init/finalize on the "arbitrary" K axis.
    if has_bias:
        x_ref, wt_ref, b_ref, o_ref, acc_ref = refs
    else:
        x_ref, wt_ref, o_ref, acc_ref = refs
        b_ref = None

    k = pl.program_id(2)

    @pl.when(k == 0)
    def _init():
        acc_ref[...] = jnp.zeros_like(acc_ref)

    acc_ref[...] += jnp.dot(x_ref[...], wt_ref[...],
                            preferred_element_type=jnp.float32)

    @pl.when(k == pl.num_programs(2) - 1)
    def _finalize():
        _epilogue(acc_ref[...], b_ref, o_ref, weight_gain, activation)


def prepare_fc_params(weight, bias=None, *, lr_multiplier=1.0, x_dtype=jnp.float32,
                      compute_dtype=None, max_tn=512, max_tk=512, min_n_blocks=2):
    """One-time parameter preparation (hoisted out of the forward path).

    weight : [out_features, in_features]   (PyTorch nn.Linear convention)
    bias   : [out_features] or None
    """
    N, K = weight.shape
    cdt = jnp.dtype(compute_dtype if compute_dtype is not None else x_dtype)

    K_hw = _round_up(K, 128)
    N_hw = _round_up(N, 128)
    tk, K_pad = _choose_tile(K_hw, max_tk, 128)
    # Prefer >=2 N blocks so both v7x TensorCores get work even for tiny-batch layers.
    tn, N_pad = _choose_tile(N_hw, max_tn, 128, min_blocks=min_n_blocks)

    # Cast + transpose ([K, N], lane axis = N) + pad ONCE, not per forward call.
    wt = _pad2d(weight.astype(cdt).T, (K_pad, N_pad))

    if bias is not None:
        b = (bias.astype(jnp.float32) * jnp.float32(lr_multiplier)).reshape(1, N)
        b = _pad2d(b, (1, N_pad))
    else:
        b = None

    return dict(wt=wt, b=b, N=N, K=K, tn=tn, tk=tk, N_pad=N_pad, K_pad=K_pad,
                weight_gain=float(lr_multiplier) / math.sqrt(K), compute_dtype=cdt)


def fc_apply(x, params, *, activation="linear", max_tm=256):
    """Forward pass using pre-prepared parameters. x: [M, in_features]."""
    if activation not in ("linear", "lrelu"):
        # TODO(synk): other bias_act activations (relu/tanh/sigmoid/swish/...) not wired up.
        raise ValueError(f"Unsupported activation: {activation!r}")

    M, K = x.shape
    assert K == params["K"], (K, params["K"])
    out_dtype = x.dtype
    cdt = params["compute_dtype"]

    sub = _sublane_granule(cdt)
    M_hw = _round_up(M, sub)
    tm, M_pad = _choose_tile(M_hw, max_tm, sub)

    K_pad, N_pad = params["K_pad"], params["N_pad"]
    tk, tn = params["tk"], params["tn"]
    has_bias = params["b"] is not None

    x_p = _pad2d(x.astype(cdt), (M_pad, K_pad))

    nm, nj, nk = M_pad // tm, N_pad // tn, K_pad // tk
    operands = [x_p, params["wt"]]

    if nk == 1:
        # Single-K-step fast path: 2-D grid, no accumulator scratch.
        in_specs = [pl.BlockSpec((tm, K_pad), lambda i, j: (i, 0)),
                    pl.BlockSpec((K_pad, tn), lambda i, j: (0, j))]
        if has_bias:
            in_specs.append(pl.BlockSpec((1, tn), lambda i, j: (0, j)))
            operands.append(params["b"])
        out_spec = pl.BlockSpec((tm, tn), lambda i, j: (i, j))
        kernel = functools.partial(_fc_kernel_single_k,
                                   weight_gain=params["weight_gain"],
                                   activation=activation, has_bias=has_bias)
        grid = (nm, nj)
        scratch = []
        semantics = ("parallel", "parallel")
    else:
        in_specs = [pl.BlockSpec((tm, tk), lambda i, j, k: (i, k)),
                    pl.BlockSpec((tk, tn), lambda i, j, k: (k, j))]
        if has_bias:
            in_specs.append(pl.BlockSpec((1, tn), lambda i, j, k: (0, j)))
            operands.append(params["b"])
        out_spec = pl.BlockSpec((tm, tn), lambda i, j, k: (i, j))
        kernel = functools.partial(_fc_kernel_multi_k,
                                   weight_gain=params["weight_gain"],
                                   activation=activation, has_bias=has_bias)
        grid = (nm, nj, nk)
        scratch = [pltpu.VMEM((tm, tn), jnp.float32)]
        semantics = ("parallel", "parallel", "arbitrary")

    out = pl.pallas_call(
        kernel,
        out_shape=jax.ShapeDtypeStruct((M_pad, N_pad), out_dtype),
        grid_spec=pltpu.PrefetchScalarGridSpec(
            num_scalar_prefetch=0,
            grid=grid,
            in_specs=in_specs,
            out_specs=out_spec,
            scratch_shapes=scratch),
        compiler_params=pltpu.CompilerParams(
            dimension_semantics=semantics,
            vmem_limit_bytes=32 * 1024 * 1024),
    )(*operands)

    if (M_pad, N_pad) != (M, params["N"]):
        out = out[:M, :params["N"]]
    return out


def fully_connected_layer(x, weight, bias=None, *, activation="linear",
                          lr_multiplier=1.0, **prep_kwargs):
    """Convenience one-shot API (prep + apply); prefer prepare_fc_params + fc_apply
    when the same parameters are reused across many forward calls."""
    params = prepare_fc_params(weight, bias, lr_multiplier=lr_multiplier,
                               x_dtype=x.dtype, **prep_kwargs)
    return fc_apply(x, params, activation=activation)


def _reference(x, weight, bias, activation, lr_multiplier):
    weight_gain = lr_multiplier / math.sqrt(x.shape[1])
    w = weight.astype(x.dtype) * weight_gain
    y = x @ w.T
    if bias is not None:
        y = y + (bias.astype(x.dtype) * lr_multiplier)
    if activation == "lrelu":
        y = jnp.where(y >= 0, y, 0.2 * y) * np.sqrt(2.0)
    return y


if __name__ == "__main__":
    key = jax.random.PRNGKey(0)
    k_x, k_w, k_b, k_x2, k_w2, k_b2 = jax.random.split(key, 6)

    batch = 16
    in_features = 32
    out_features = 64

    x = jax.random.normal(k_x, (batch, in_features), dtype=jnp.float32)

    # Case 1: linear activation, bias, lr_multiplier = 1 (default FC config).
    lr_mult = 1.0
    weight = jax.random.normal(k_w, (out_features, in_features), dtype=jnp.float32) / lr_mult
    bias = jnp.zeros((out_features,), dtype=jnp.float32)
    params1 = prepare_fc_params(weight, bias, lr_multiplier=lr_mult, x_dtype=x.dtype)
    out1 = jax.block_until_ready(fc_apply(x, params1, activation="linear"))
    ref1 = _reference(x, weight, bias, "linear", lr_mult)
    np.testing.assert_allclose(np.asarray(out1), np.asarray(ref1), rtol=1e-4, atol=1e-4)

    # Case 2: lrelu activation, nonzero bias, lr_multiplier = 0.01 (mapping-net style).
    lr_mult = 0.01
    weight2 = jax.random.normal(k_w, (out_features, in_features), dtype=jnp.float32) / lr_mult
    bias2 = jax.random.normal(k_b, (out_features,), dtype=jnp.float32)
    params2 = prepare_fc_params(weight2, bias2, lr_multiplier=lr_mult, x_dtype=x.dtype)
    out2 = jax.block_until_ready(fc_apply(x, params2, activation="lrelu"))
    ref2 = _reference(x, weight2, bias2, "lrelu", lr_mult)
    np.testing.assert_allclose(np.asarray(out2), np.asarray(ref2), rtol=1e-4, atol=1e-4)

    # Case 3: no bias, convenience API.
    out3 = jax.block_until_ready(
        fully_connected_layer(x, weight, None, activation="linear", lr_multiplier=1.0))
    ref3 = _reference(x, weight, None, "linear", 1.0)
    np.testing.assert_allclose(np.asarray(out3), np.asarray(ref3), rtol=1e-4, atol=1e-4)

    # Case 4: exercise the multi-K accumulator path and non-divisor N padding
    # (in_features=512 with max_tk=256 -> 2 K steps; out_features=384 -> tn=256, N_pad=512).
    xb = jax.random.normal(k_x2, (8, 512), dtype=jnp.float32)
    weight4 = jax.random.normal(k_w2, (384, 512), dtype=jnp.float32)
    bias4 = jax.random.normal(k_b2, (384,), dtype=jnp.float32)
    params4 = prepare_fc_params(weight4, bias4, lr_multiplier=1.0, x_dtype=xb.dtype,
                                max_tk=256)
    out4 = jax.block_until_ready(fc_apply(xb, params4, activation="lrelu"))
    ref4 = _reference(xb, weight4, bias4, "lrelu", 1.0)
    np.testing.assert_allclose(np.asarray(out4), np.asarray(ref4), rtol=1e-4, atol=1e-4)

    print("KERNEL_OK")
</pallas_src>

<mosaic_0001>
module attributes {stable_mosaic.version = 11 : i64} {
  func.func @_fc_kernel_single_k(%arg0: i32, %arg1: i32, %arg2: memref<16x128xf32, #tpu.memory_space<vmem>>, %arg3: memref<128x128xf32, #tpu.memory_space<vmem>>, %arg4: memref<1x128xf32, #tpu.memory_space<vmem>>, %arg5: memref<16x128xf32, #tpu.memory_space<vmem>>) attributes {dimension_semantics = [#tpu.dimension_semantics<parallel>, #tpu.dimension_semantics<parallel>], iteration_bounds = array<i64: 1, 1>, scalar_prefetch = 0 : i64, scratch_operands = 0 : i64, tpu.core_type = #tpu.core_type<tc>, window_params = [{transform_indices = @transform_0, window_bounds = array<i64: 16, 128>}, {transform_indices = @transform_1, window_bounds = array<i64: 128, 128>}, {transform_indices = @transform_2, window_bounds = array<i64: 1, 128>}, {transform_indices = @transform_3, window_bounds = array<i64: 16, 128>}]} {
    %c0 = arith.constant 0 : index
    %c0_0 = arith.constant 0 : index
    %0 = vector.load %arg2[%c0, %c0_0] : memref<16x128xf32, #tpu.memory_space<vmem>>, vector<16x128xf32>
    %c0_1 = arith.constant 0 : index
    %c0_2 = arith.constant 0 : index
    %1 = vector.load %arg3[%c0_1, %c0_2] : memref<128x128xf32, #tpu.memory_space<vmem>>, vector<128x128xf32>
    %cst = arith.constant dense<0.000000e+00> : vector<16x128xf32>
    %2 = tpu.matmul %0, %1, %cst {dimension_numbers = #tpu.dot_dimension_numbers<[1], [0], [0], [1], [0, 0, 1, 1], [], []>} : vector<16x128xf32>, vector<128x128xf32>, vector<16x128xf32> -> vector<16x128xf32>
    %cst_3 = arith.constant 0.176776692 : f32
    %3 = vector.broadcast %cst_3 : f32 to vector<16x128xf32>
    %4 = arith.mulf %2, %3 : vector<16x128xf32>
    %c0_4 = arith.constant 0 : index
    %c0_5 = arith.constant 0 : index
    %5 = vector.load %arg4[%c0_4, %c0_5] : memref<1x128xf32, #tpu.memory_space<vmem>>, vector<1x128xf32>
    %6 = vector.broadcast %5 : vector<1x128xf32> to vector<16x128xf32>
    %7 = arith.addf %4, %6 : vector<16x128xf32>
    %c0_6 = arith.constant 0 : index
    %c0_7 = arith.constant 0 : index
    %8 = vector.load %arg5[%c0_6, %c0_7] : memref<16x128xf32, #tpu.memory_space<vmem>>, vector<16x128xf32>
    tpu.vector_store %arg5[%c0_6, %c0_7], %7 {strides = array<i32>} : memref<16x128xf32, #tpu.memory_space<vmem>>, vector<16x128xf32>,
    return
  }
  func.func @transform_0(%arg0: i32, %arg1: i32) -> (i32, i32) {
    %c0_i32 = arith.constant 0 : i32
    %c0_i32_0 = arith.constant 0 : i32
    return %arg0, %c0_i32 : i32, i32
  }
  func.func @transform_1(%arg0: i32, %arg1: i32) -> (i32, i32) {
    %c0_i32 = arith.constant 0 : i32
    %c0_i32_0 = arith.constant 0 : i32
    return %c0_i32, %arg1 : i32, i32
  }
  func.func @transform_2(%arg0: i32, %arg1: i32) -> (i32, i32) {
    %c0_i32 = arith.constant 0 : i32
    %c0_i32_0 = arith.constant 0 : i32
    return %c0_i32, %arg1 : i32, i32
  }
  func.func @transform_3(%arg0: i32, %arg1: i32) -> (i32, i32) {
    %c0_i32 = arith.constant 0 : i32
    return %arg0, %arg1 : i32, i32
  }
}

</mosaic_0001>

<bundles_post_ra>
// kernel: tpu_custom_call.1
= control target key start
LH: loop header
LB: loop body
LE: loop exit
PB: predicated region body
PF: predicated region fallthrough
CT: control target
= control target key end

     0   :  { %8 = vsyncpa [#allocation3], 0  ;;  %s338_s0 = inlined_call_operand.hbm [shape: f32[16,128], index: 0, kind: input, shape index: {}]   ;;  %s339_s1 = inlined_call_operand.hbm [shape: f32[128,128], index: 1, kind: input, shape index: {}]   ;;  %s340_s2 = inlined_call_operand.vmem [shape: f32[1,128], index: 2, kind: input, shape index: {}]   ;;  %s341_s3 = inlined_call_operand.hbm [shape: f32[16,128], index: 3, kind: output, shape index: {}]  }
   0x1   :  { %9 = vsyncpa [#allocation6], 0 }
   0x2   :  { %10 = vsyncpa [#allocation4], 0  ;;  %s292_s12 = smov [#allocation2]  }
   0x3   :  { %s16_s13 = sshll.u32 %s292_s12, 4  ;;  %s17_s13 = int_to_ptr.vmem [resolvable:$true] %s16_s13 }
   0x4   :  { %s234_s14 = scalar_lea.vmem %s17_s13, 256  ;;  %p239_p1 = scmp.lt.s32.totalorder %s17_s13, %s17_s13 }
   0x5   :  { %p235_p0 = scmp.ne.s32.totalorder %s17_s13, %s234_s14  ;;  %p240_p2 = scmp.lt.s32.totalorder %s234_s14, %s234_s14 }
   0x7   :  { %p241_p3 = por %p240_p2, %p239_p1 }
   0x9   :  { %p242_p4 = pnand %p241_p3, %p235_p0 }
   0xb   :  { %245 = shalt.err (!%p242_p4)
}
   0xc   :  { %s293_s15 = smov 128   ;;  %s294_s16 = smov 8  }
   0xd   :  { %22 = dma.hbm_to_vmem [thread:$0]  %s338_s0, 256, %s17_s13, [#allocation3], %s293_s15, %s293_s15, %s294_s16  }
   0xe   :  { %s295_s19 = smov [#allocation5]  }
   0xf   :  { %s28_s20 = sshll.u32 %s295_s19, 4  ;;  %s29_s20 = int_to_ptr.vmem [resolvable:$true] %s28_s20 }
  0x10   :  { %s254_s21 = scalar_lea.vmem %s29_s20, 2048  ;;  %p259_p6 = scmp.lt.s32.totalorder %s29_s20, %s29_s20 }
  0x11   :  { %p255_p5 = scmp.ne.s32.totalorder %s29_s20, %s254_s21  ;;  %p260_p7 = scmp.lt.s32.totalorder %s254_s21, %s254_s21 }
  0x13   :  { %p261_p8 = por %p260_p7, %p259_p6 }
  0x15   :  { %p262_p9 = pnand %p261_p8, %p255_p5 }
  0x17   :  { %265 = shalt.err (!%p262_p9)
}
  0x18   :  { %34 = dma.hbm_to_vmem [thread:$0]  %s339_s1, 2048, %s29_s20, [#allocation6], %s293_s15, %s293_s15, %s294_s16  }
  0x19   :  { %286 = dma.done.wait [#allocation3], 256  }
  0x1a   :  { %287 = vsyncadd [#allocation3], 4294967040 }
  0x1b   :  { %288 = dma.done.wait [#allocation6], 2048  }
  0x1c   :  { %289 = vsyncadd [#allocation6], 4294965248  ;;  %v60_v0 = vld [vmem:[#allocation5 + $0x78] sm:$0xff]  ;;  %v59_v1 = vld [vmem:[#allocation5 + $0x70] sm:$0xff]  ;;  %s296_s24 = smov [#allocation7]  }
  0x1d   :  { %186 = vmatprep.subr.mxu0 %v60_v0  ;;  %v58_v2 = vld [vmem:[#allocation5 + $0x68] sm:$0xff]  ;;  %v57_v3 = vld [vmem:[#allocation5 + $0x60] sm:$0xff]  ;;  %v43_v4 = vld [vmem:[#allocation2] sm:$0xff]  ;;  %s154_s25 = sshll.u32 %s296_s24, 4  ;;  %s155_s25 = int_to_ptr.vmem [resolvable:$true] %s154_s25 }
  0x1e   :  { %187 = vmatpush3.msra.mxu0 %v60_v0  ;;  %v56_v5 = vld [vmem:[#allocation5 + $0x58] sm:$0xff]  ;;  %218 = vmatprep.mubr.f32.mxu0 %v43_v4  ;;  %v55_v6 = vld [vmem:[#allocation5 + $0x50] sm:$0xff]  ;;  %v54_v7 = vld [vmem:[#allocation5 + $0x48] sm:$0xff]  ;;  %s266_s26 = scalar_lea.vmem %s155_s25, 256  ;;  %p271_p11 = scmp.lt.s32.totalorder %s155_s25, %s155_s25 }
  0x1f   :  { %188 = vmatprep.subr.mxu0 %v59_v1  ;;  %v53_v8 = vld [vmem:[#allocation5 + $0x40] sm:$0xff]  ;;  %v52_v9 = vld [vmem:[#allocation5 + $0x38] sm:$0xff]  ;;  %v51_v10 = vld [vmem:[#allocation5 + $0x30] sm:$0xff]  ;;  %p267_p10 = scmp.ne.s32.totalorder %s155_s25, %s266_s26  ;;  %p272_p12 = scmp.lt.s32.totalorder %s266_s26, %s266_s26 }
  0x20   :  { %189 = vmatpush3.msra.mxu0 %v59_v1  ;;  %v50_v11 = vld [vmem:[#allocation5 + $0x28] sm:$0xff]  ;;  %v49_v12 = vld [vmem:[#allocation5 + $0x20] sm:$0xff]  ;;  %v48_v13 = vld [vmem:[#allocation5 + $0x18] sm:$0xff] }
  0x21   :  { %190 = vmatprep.subr.mxu0 %v58_v2  ;;  %v47_v14 = vld [vmem:[#allocation5 + $0x10] sm:$0xff]  ;;  %v46_v15 = vld [vmem:[#allocation5 + $0x8] sm:$0xff]  ;;  %v45_v16 = vld [vmem:[#allocation5] sm:$0xff]  ;;  %p273_p13 = por %p272_p12, %p271_p11 }
  0x22   :  { %191 = vmatpush3.msra.mxu0 %v58_v2  ;;  %v44_v17 = vld [vmem:[#allocation2 + $0x8] sm:$0xff]  ;;  %v167_v19 = vld [vmem:[%s340_s2] ss:$0 sm:$0xff] }
  0x23   :  { %192 = vmatprep.subr.mxu0 %v57_v3  ;;  %p274_p0 = pnand %p273_p13, %p267_p10 }
  0x24   :  { %193 = vmatpush3.msra.mxu0 %v57_v3 }
  0x25   :  { %194 = vmatprep.subr.mxu0 %v56_v5 }
  0x26   :  { %195 = vmatpush3.msra.mxu0 %v56_v5 }
  0x27   :  { %196 = vmatprep.subr.mxu0 %v55_v6 }
  0x28   :  { %197 = vmatpush3.msra.mxu0 %v55_v6 }
  0x29   :  { %198 = vmatprep.subr.mxu0 %v54_v7 }
  0x2a   :  { %199 = vmatpush3.msra.mxu0 %v54_v7 }
  0x2b   :  { %200 = vmatprep.subr.mxu0 %v53_v8 }
  0x2c   :  { %201 = vmatpush3.msra.mxu0 %v53_v8 }
  0x2d   :  { %202 = vmatprep.subr.mxu0 %v52_v9 }
  0x2e   :  { %203 = vmatpush3.msra.mxu0 %v52_v9 }
  0x2f   :  { %204 = vmatprep.subr.mxu0 %v51_v10 }
  0x30   :  { %205 = vmatpush3.msra.mxu0 %v51_v10 }
  0x31   :  { %206 = vmatprep.subr.mxu0 %v50_v11 }
  0x32   :  { %207 = vmatpush3.msra.mxu0 %v50_v11 }
  0x33   :  { %208 = vmatprep.subr.mxu0 %v49_v12 }
  0x34   :  { %209 = vmatpush3.msra.mxu0 %v49_v12 }
  0x35   :  { %210 = vmatprep.subr.mxu0 %v48_v13 }
  0x36   :  { %211 = vmatpush3.msra.mxu0 %v48_v13 }
  0x37   :  { %212 = vmatprep.subr.mxu0 %v47_v14 }
  0x38   :  { %213 = vmatpush3.msra.mxu0 %v47_v14 }
  0x39   :  { %214 = vmatprep.subr.mxu0 %v46_v15 }
  0x3a   :  { %215 = vmatpush3.msra.mxu0 %v46_v15 }
  0x3b   :  { %216 = vmatprep.subr.mxu0 %v45_v16 }
  0x3c   :  { %217 = vmatpush3.msra.mxu0 %v45_v16 }
  0x3d   :  { %219 = vmatmul.mubr.f32.vlgmr.msra.gmra.mxu0 %v44_v17 }
  0xfd   :  { %v220_v18 = vpop.f32.mrf.mxu0 }
  0xfe   :  { %v137_v20 = vmul.f32 0.17677669, %v220_v18 }
  0xff   :  { %v127_v21 = vpop.f32.mrf.mxu0 }
 0x100   :  { %v146_v22 = vadd.f32 %v167_v19, %v137_v20  ;;  %v136_v23 = vmul.f32 0.17677669, %v127_v21 }
 0x102   :  { %148 = vst [vmem:[#allocation7 + $0x8] sm:$0xff] %v146_v22  ;;  %v145_v24 = vadd.f32 %v167_v19, %v136_v23 }
 0x104   :  { %147 = vst [vmem:[#allocation7] sm:$0xff] %v145_v24 }
 0x105   :  { %277 = shalt.err (!%p274_p0)
}
 0x106   :  { %160 = dma.vmem_to_hbm [thread:$0]  %s155_s25, 256, %s341_s3, [#allocation4], %s293_s15, %s293_s15, %s294_s16  }
 0x107   :  { %290 = dma.done.wait [#allocation4], 256  }
 0x108   :  { %291 = vsyncadd [#allocation4], 4294967040 }
 0x109   :  { %164 = vsyncpa [#allocation3], 1 }
 0x10a   :  { %165 = vsyncpa [#allocation6], 1 }
 0x10b   :  { %166 = vsyncpa [#allocation4], 1 }

</bundles_post_ra>
